<compile_context>
chip_gen: v5e
topology: v5e:2x2
jax: 0.10.0
libtpu: 0.0.40
codegen_flags: <defaults>
</compile_context>

<pallas_src>
import functools

import jax
import jax.numpy as jnp
from jax.experimental import pallas as pl
from jax.experimental.pallas import tpu as pltpu

N_GMM = 2
Z_DIM = 1
IN_DIM = 118
PAD_DIM = 128  # lane-dense output width

_MU, _LOGVAR, _Z, _ZAUG, _GAMMA = 118, 119, 120, 121, 124


def _round_up(a, b):
    return (a + b - 1) // b * b


def _cdiv(a, b):
    return -(-a // b)


# ----------------------------------------------------------------------------
# Packed-parameter layout (all offsets are static Python ints).
# ----------------------------------------------------------------------------
# bf16 MXU-weight slab: rows 16-aligned (bf16 sublane tile), 128 lanes wide.
_W_LAYOUT = (("fc1", IN_DIM, 60), ("fc2", 60, 30), ("fc3", 30, 10),
             ("fc6", 10, 30), ("fc7", 30, 60), ("fc8", 60, PAD_DIM))
_W_OFFSETS = {}
_row = 0
for _name, _k, _n in _W_LAYOUT:
    _W_OFFSETS[_name] = (_row, _k, _n)
    _row += _round_up(_k, 16)
_W_ROWS = _round_up(_row, 16)

# f32 slab: biases + tiny VPU-path weights, one row each (128 lanes wide).
(_R_B1, _R_B2, _R_B3, _R_B5, _R_B6, _R_B7, _R_B8, _R_B9) = range(8)
_R_W5 = 8          # fc5 weight (1, 10)
_R_W9 = 9          # fc9 weight (3, 10) -> rows 9..11
_R_WMU = 12        # fc_mu weight (10,)
_R_WLV = 13        # fc_logvar weight (10,)
_R_W10D = 14       # fc10 weight column difference w10[:,1] - w10[:,0]
_R_BMU = 15        # fc_mu bias      (lane 0)
_R_BLV = 16        # fc_logvar bias  (lane 0)
_R_B10D = 17       # fc10 bias diff  (lane 0)
_F_ROWS = 24


# ----------------------------------------------------------------------------
# Kernel
# ----------------------------------------------------------------------------
def dagmm_vae_kernel(x_ref, eps_ref, w_ref, f_ref, out_ref):
    f32 = jnp.float32

    def mm(a, name):
        off, k, n = _W_OFFSETS[name]
        return jnp.dot(a.astype(jnp.bfloat16), w_ref[off:off + k, 0:n],
                       preferred_element_type=f32)

    def frow(r, n):
        return f_ref[r:r + 1, 0:n]

    def fscalar(r):
        return f_ref[r:r + 1, 0:1]

    x = x_ref[...]                                         # (T, 118) f32

    # ---- encoder (bf16 MXU, f32 accumulation) ----
    h = jnp.tanh(mm(x, "fc1") + frow(_R_B1, 60))           # (T, 60)
    h = jnp.tanh(mm(h, "fc2") + frow(_R_B2, 30))           # (T, 30)
    h = jnp.tanh(mm(h, "fc3") + frow(_R_B3, 10))           # (T, 10)

    # ---- mu / logvar heads: N = 1 -> exact f32 VPU mul + lane reduce ----
    mu = jnp.sum(h * frow(_R_WMU, 10), axis=1, keepdims=True) + fscalar(_R_BMU)
    logvar = jnp.sum(h * frow(_R_WLV, 10), axis=1, keepdims=True) + fscalar(_R_BLV)

    # ---- reparameterize (eps supplied from host RNG) ----
    std = jnp.exp(0.5 * logvar)
    z = mu + eps_ref[...] * std                            # (T, 1)

    # ---- decoder; fc5 has K = z_dim = 1 -> VPU broadcast FMA ----
    d = jnp.tanh(z * frow(_R_W5, 10) + frow(_R_B5, 10))    # (T, 10)
    d = jnp.tanh(mm(d, "fc6") + frow(_R_B6, 30))           # (T, 30)
    d = jnp.tanh(mm(d, "fc7") + frow(_R_B7, 60))           # (T, 60)
    x_hat = mm(d, "fc8") + frow(_R_B8, PAD_DIM)            # (T, 128); lanes>=118 == 0

    # ---- reconstruction features: direct ||x - x_hat|| (no cancellation) ----
    xh = x_hat[:, :IN_DIM]                                 # (T, 118)
    diff = x - xh
    sum_d2 = jnp.sum(diff * diff, axis=1, keepdims=True)
    sum_xx = jnp.sum(x * x, axis=1, keepdims=True)
    sum_hh = jnp.sum(xh * xh, axis=1, keepdims=True)
    dot_xh = jnp.sum(x * xh, axis=1, keepdims=True)
    x_norm = jnp.sqrt(sum_xx)
    rel_euc = jnp.sqrt(sum_d2) / (x_norm + 1e-12)
    cos_sim = dot_xh / (jnp.maximum(x_norm, 1e-8) *
                        jnp.maximum(jnp.sqrt(sum_hh), 1e-8))

    # ---- estimation net; fc9 K = 3 -> VPU broadcast FMAs ----
    # TODO(synk): F.dropout(p=0.5, training=self.training) treated as identity
    # (eval mode); no stochastic dropout applied.
    e = jnp.tanh(z * frow(_R_W9, 10)
                 + rel_euc * f_ref[_R_W9 + 1:_R_W9 + 2, 0:10]
                 + cos_sim * f_ref[_R_W9 + 2:_R_W9 + 3, 0:10]
                 + frow(_R_B9, 10))                        # (T, 10)
    # 2-class softmax == sigmoid of the logit difference (exact, f32 VPU head).
    ldiff = (jnp.sum(e * frow(_R_W10D, 10), axis=1, keepdims=True)
             + fscalar(_R_B10D))
    g0 = 1.0 / (1.0 + jnp.exp(ldiff))
    g1 = 1.0 - g0

    # ---- pack scalars into lanes 118..125 via one-hot mul-adds ----
    lane = jax.lax.broadcasted_iota(jnp.int32, (1, PAD_DIM), 1)
    oh = lambda l: (lane == l).astype(f32)
    out_ref[...] = (x_hat
                    + mu * oh(_MU) + logvar * oh(_LOGVAR)
                    + z * (oh(_Z) + oh(_ZAUG))
                    + rel_euc * oh(_ZAUG + 1) + cos_sim * oh(_ZAUG + 2)
                    + g0 * oh(_GAMMA) + g1 * oh(_GAMMA + 1))


# ----------------------------------------------------------------------------
# Parameters
# ----------------------------------------------------------------------------
_LAYERS = [
    ("fc1", 118, 60), ("fc2", 60, 30), ("fc3", 30, 10),
    ("fc_mu", 10, Z_DIM), ("fc_logvar", 10, Z_DIM),
    ("fc5", Z_DIM, 10), ("fc6", 10, 30), ("fc7", 30, 60), ("fc8", 60, 118),
    ("fc9", Z_DIM + 2, 10), ("fc10", 10, N_GMM),
]


def init_torch_params(key):
    """PyTorch nn.Linear init U(-1/sqrt(fan_in), 1/sqrt(fan_in)).
    Weights stored already transposed to (in, out), f32."""
    params = {}
    for name, fan_in, fan_out in _LAYERS:
        key, kw, kb = jax.random.split(key, 3)
        bound = 1.0 / jnp.sqrt(float(fan_in))
        w = jax.random.uniform(kw, (fan_in, fan_out), jnp.float32, -bound, bound)
        b = jax.random.uniform(kb, (fan_out,), jnp.float32, -bound, bound)
        params[name] = (w, b)
    return params


def pack_kernel_params(p):
    """Pack all parameters into one bf16 MXU-weight slab and one f32 slab."""
    wslab = jnp.zeros((_W_ROWS, PAD_DIM), jnp.float32)
    for name, _, _ in _W_LAYOUT:
        off = _W_OFFSETS[name][0]
        w = p[name][0]
        wslab = wslab.at[off:off + w.shape[0], :w.shape[1]].set(w)
    wslab = wslab.astype(jnp.bfloat16)

    f = jnp.zeros((_F_ROWS, PAD_DIM), jnp.float32)
    setrow = lambda f, r, v: f.at[r, :v.shape[0]].set(v)
    f = setrow(f, _R_B1, p["fc1"][1])
    f = setrow(f, _R_B2, p["fc2"][1])
    f = setrow(f, _R_B3, p["fc3"][1])
    f = setrow(f, _R_B5, p["fc5"][1])
    f = setrow(f, _R_B6, p["fc6"][1])
    f = setrow(f, _R_B7, p["fc7"][1])
    f = setrow(f, _R_B8, p["fc8"][1])          # lanes 118..127 stay 0
    f = setrow(f, _R_B9, p["fc9"][1])
    f = setrow(f, _R_W5, p["fc5"][0][0])                       # (10,)
    f = f.at[_R_W9:_R_W9 + 3, :10].set(p["fc9"][0])            # (3, 10)
    f = setrow(f, _R_WMU, p["fc_mu"][0][:, 0])                 # (10,)
    f = setrow(f, _R_WLV, p["fc_logvar"][0][:, 0])             # (10,)
    f = setrow(f, _R_W10D, p["fc10"][0][:, 1] - p["fc10"][0][:, 0])
    f = f.at[_R_BMU, 0].set(p["fc_mu"][1][0])
    f = f.at[_R_BLV, 0].set(p["fc_logvar"][1][0])
    f = f.at[_R_B10D, 0].set(p["fc10"][1][1] - p["fc10"][1][0])
    return wslab, f


# ----------------------------------------------------------------------------
# Wrapper
# ----------------------------------------------------------------------------
@functools.partial(jax.jit, static_argnames=("tile_b",))
def _forward_impl(x, eps, wslab, fslab, tile_b):
    B = x.shape[0]
    grid = (_cdiv(B, tile_b),)

    slab = pl.pallas_call(
        dagmm_vae_kernel,
        out_shape=jax.ShapeDtypeStruct((B, PAD_DIM), jnp.float32),
        grid=grid,
        in_specs=[
            pl.BlockSpec((tile_b, IN_DIM), lambda i: (i, 0)),   # x (no host pad)
            pl.BlockSpec((tile_b, Z_DIM), lambda i: (i, 0)),    # eps
            pl.BlockSpec(wslab.shape, lambda i: (0, 0)),        # bf16 weight slab
            pl.BlockSpec(fslab.shape, lambda i: (0, 0)),        # f32 slab
        ],
        out_specs=pl.BlockSpec((tile_b, PAD_DIM), lambda i: (i, 0)),
        compiler_params=pltpu.CompilerParams(
            dimension_semantics=("parallel",),     # megacore split on v7x
            vmem_limit_bytes=48 * 1024 * 1024),    # big tiles fit on v5e too
    )(x, eps, wslab, fslab)

    return {
        "mu": slab[:, _MU:_MU + 1],
        "logvar": slab[:, _LOGVAR:_LOGVAR + 1],
        "z": slab[:, _Z:_Z + 1],
        "x_hat": slab[:, :IN_DIM],
        "z_aug": slab[:, _ZAUG:_ZAUG + Z_DIM + 2],
        "gamma": slab[:, _GAMMA:_GAMMA + N_GMM],
    }


def dagmm_vae_forward(x, eps, wslab, fslab, tile_b=None):
    assert x.shape[1] == IN_DIM
    B = x.shape[0]
    if tile_b is None:
        if B <= 512:
            tile_b = B                                   # single grid step
        else:
            # HBM-stream bound: aim for ~2048-row tiles, and force an even
            # number of >= 2 grid steps so both v7x TensorCores get work.
            steps = max(2, _cdiv(B, 2048))
            if steps % 2:
                steps += 1
            tile_b = _round_up(_cdiv(B, steps), 8)
    return _forward_impl(x, eps, wslab, fslab, tile_b)


# ----------------------------------------------------------------------------
# Pure-JAX reference (f32, torch semantics) for a sanity check.
# ----------------------------------------------------------------------------
def dagmm_vae_reference(x, eps, p):
    lin = lambda a, wb: a @ wb[0] + wb[1]
    h = jnp.tanh(lin(x, p["fc1"]))
    h = jnp.tanh(lin(h, p["fc2"]))
    h = jnp.tanh(lin(h, p["fc3"]))
    mu = lin(h, p["fc_mu"])
    logvar = lin(h, p["fc_logvar"])
    z = mu + eps * jnp.exp(0.5 * logvar)
    d = jnp.tanh(lin(z, p["fc5"]))
    d = jnp.tanh(lin(d, p["fc6"]))
    d = jnp.tanh(lin(d, p["fc7"]))
    x_hat = lin(d, p["fc8"])
    diff_norm = jnp.linalg.norm(x - x_hat, axis=1, keepdims=True)
    x_norm = jnp.linalg.norm(x, axis=1, keepdims=True)
    xh_norm = jnp.linalg.norm(x_hat, axis=1, keepdims=True)
    rel = diff_norm / (x_norm + 1e-12)
    cos = jnp.sum(x * x_hat, axis=1, keepdims=True) / (
        jnp.maximum(x_norm, 1e-8) * jnp.maximum(xh_norm, 1e-8))
    z_aug = jnp.concatenate([z, rel, cos], axis=1)
    e = jnp.tanh(lin(z_aug, p["fc9"]))
    gamma = jax.nn.softmax(lin(e, p["fc10"]), axis=1)
    return {"mu": mu, "logvar": logvar, "z": z, "x_hat": x_hat,
            "z_aug": z_aug, "gamma": gamma}


if __name__ == "__main__":
    key = jax.random.PRNGKey(0)
    k_params, k_x, k_eps = jax.random.split(key, 3)

    B = 8
    x = jax.random.normal(k_x, (B, IN_DIM), jnp.float32)
    eps = jax.random.normal(k_eps, (B, Z_DIM), jnp.float32)

    torch_params = init_torch_params(k_params)
    wslab, fslab = pack_kernel_params(torch_params)

    out = dagmm_vae_forward(x, eps, wslab, fslab)
    jax.block_until_ready(out)

    assert out["mu"].shape == (B, Z_DIM)
    assert out["logvar"].shape == (B, Z_DIM)
    assert out["z"].shape == (B, Z_DIM)
    assert out["x_hat"].shape == (B, IN_DIM)
    assert out["z_aug"].shape == (B, Z_DIM + 2)
    assert out["gamma"].shape == (B, N_GMM)
    # gamma rows must sum to 1 (softmax / sigmoid pair)
    assert jnp.allclose(jnp.sum(out["gamma"], axis=1), 1.0, atol=1e-5)

    # Sanity check vs. f32 reference (loose tolerance: MXU inputs are bf16).
    ref = dagmm_vae_reference(x, eps, torch_params)
    for name in ("mu", "logvar", "z", "x_hat", "z_aug", "gamma"):
        assert jnp.allclose(out[name], ref[name], atol=5e-2, rtol=5e-2), name

    print("KERNEL_OK")
</pallas_src>

<mosaic_0001>
module attributes {stable_mosaic.version = 11 : i64} {
  func.func @dagmm_vae_kernel(%arg0: i32, %arg1: memref<8x118xf32, #tpu.memory_space<vmem>>, %arg2: memref<8x1xf32, #tpu.memory_space<vmem>>, %arg3: memref<336x128xbf16, #tpu.memory_space<vmem>>, %arg4: memref<24x128xf32, #tpu.memory_space<vmem>>, %arg5: memref<8x128xf32, #tpu.memory_space<vmem>>) attributes {dimension_semantics = [#tpu.dimension_semantics<parallel>], iteration_bounds = array<i64: 1>, scalar_prefetch = 0 : i64, scratch_operands = 0 : i64, tpu.core_type = #tpu.core_type<tc>, window_params = [{transform_indices = @transform_0, window_bounds = array<i64: 8, 118>}, {transform_indices = @transform_1, window_bounds = array<i64: 8, 1>}, {pipeline_mode = #tpu.pipeline_mode<synchronous>, transform_indices = @transform_2, window_bounds = array<i64: 336, 128>}, {pipeline_mode = #tpu.pipeline_mode<synchronous>, transform_indices = @transform_3, window_bounds = array<i64: 24, 128>}, {transform_indices = @transform_4, window_bounds = array<i64: 8, 128>}]} {
    %c0 = arith.constant 0 : index
    %c0_0 = arith.constant 0 : index
    %0 = vector.load %arg1[%c0, %c0_0] : memref<8x118xf32, #tpu.memory_space<vmem>>, vector<8x118xf32>
    %1 = arith.truncf %0 : vector<8x118xf32> to vector<8x118xbf16>
    %c0_1 = arith.constant 0 : index
    %c0_2 = arith.constant 0 : index
    %2 = vector.load %arg3[%c0_1, %c0_2] : memref<336x128xbf16, #tpu.memory_space<vmem>>, vector<118x60xbf16>
    %cst = arith.constant dense<0.000000e+00> : vector<8x60xf32>
    %3 = tpu.matmul %1, %2, %cst {dimension_numbers = #tpu.dot_dimension_numbers<[1], [0], [0], [1], [0, 0, 1, 1], [], []>} : vector<8x118xbf16>, vector<118x60xbf16>, vector<8x60xf32> -> vector<8x60xf32>
    %c0_3 = arith.constant 0 : index
    %c0_4 = arith.constant 0 : index
    %4 = vector.load %arg4[%c0_3, %c0_4] : memref<24x128xf32, #tpu.memory_space<vmem>>, vector<1x60xf32>
    %5 = vector.broadcast %4 : vector<1x60xf32> to vector<8x60xf32>
    %6 = arith.addf %3, %5 : vector<8x60xf32>
    %7 = math.tanh %6 : vector<8x60xf32>
    %8 = arith.truncf %7 : vector<8x60xf32> to vector<8x60xbf16>
    %c128 = arith.constant 128 : index
    %c0_5 = arith.constant 0 : index
    %9 = vector.load %arg3[%c128, %c0_5] : memref<336x128xbf16, #tpu.memory_space<vmem>>, vector<60x30xbf16>
    %cst_6 = arith.constant dense<0.000000e+00> : vector<8x30xf32>
    %10 = tpu.matmul %8, %9, %cst_6 {dimension_numbers = #tpu.dot_dimension_numbers<[1], [0], [0], [1], [0, 0, 1, 1], [], []>} : vector<8x60xbf16>, vector<60x30xbf16>, vector<8x30xf32> -> vector<8x30xf32>
    %c1 = arith.constant 1 : index
    %c0_7 = arith.constant 0 : index
    %11 = vector.load %arg4[%c1, %c0_7] : memref<24x128xf32, #tpu.memory_space<vmem>>, vector<1x30xf32>
    %12 = vector.broadcast %11 : vector<1x30xf32> to vector<8x30xf32>
    %13 = arith.addf %10, %12 : vector<8x30xf32>
    %14 = math.tanh %13 : vector<8x30xf32>
    %15 = arith.truncf %14 : vector<8x30xf32> to vector<8x30xbf16>
    %c192 = arith.constant 192 : index
    %c0_8 = arith.constant 0 : index
    %16 = vector.load %arg3[%c192, %c0_8] : memref<336x128xbf16, #tpu.memory_space<vmem>>, vector<30x10xbf16>
    %cst_9 = arith.constant dense<0.000000e+00> : vector<8x10xf32>
    %17 = tpu.matmul %15, %16, %cst_9 {dimension_numbers = #tpu.dot_dimension_numbers<[1], [0], [0], [1], [0, 0, 1, 1], [], []>} : vector<8x30xbf16>, vector<30x10xbf16>, vector<8x10xf32> -> vector<8x10xf32>
    %c2 = arith.constant 2 : index
    %c0_10 = arith.constant 0 : index
    %18 = vector.load %arg4[%c2, %c0_10] : memref<24x128xf32, #tpu.memory_space<vmem>>, vector<1x10xf32>
    %19 = vector.broadcast %18 : vector<1x10xf32> to vector<8x10xf32>
    %20 = arith.addf %17, %19 : vector<8x10xf32>
    %21 = math.tanh %20 : vector<8x10xf32>
    %c12 = arith.constant 12 : index
    %c0_11 = arith.constant 0 : index
    %22 = vector.load %arg4[%c12, %c0_11] : memref<24x128xf32, #tpu.memory_space<vmem>>, vector<1x10xf32>
    %23 = vector.broadcast %22 : vector<1x10xf32> to vector<8x10xf32>
    %24 = arith.mulf %21, %23 : vector<8x10xf32>
    %cst_12 = arith.constant dense<0.000000e+00> : vector<8xf32>
    %25 = vector.multi_reduction <add>, %24, %cst_12 [1] : vector<8x10xf32> to vector<8xf32>
    %26 = vector.shape_cast %25 : vector<8xf32> to vector<8x1xf32>
    %c15 = arith.constant 15 : index
    %c0_13 = arith.constant 0 : index
    %27 = vector.load %arg4[%c15, %c0_13] : memref<24x128xf32, #tpu.memory_space<vmem>>, vector<1x1xf32>
    %28 = vector.broadcast %27 : vector<1x1xf32> to vector<8x1xf32>
    %29 = arith.addf %26, %28 : vector<8x1xf32>
    %c13 = arith.constant 13 : index
    %c0_14 = arith.constant 0 : index
    %30 = vector.load %arg4[%c13, %c0_14] : memref<24x128xf32, #tpu.memory_space<vmem>>, vector<1x10xf32>
    %31 = vector.broadcast %30 : vector<1x10xf32> to vector<8x10xf32>
    %32 = arith.mulf %21, %31 : vector<8x10xf32>
    %cst_15 = arith.constant dense<0.000000e+00> : vector<8xf32>
    %33 = vector.multi_reduction <add>, %32, %cst_15 [1] : vector<8x10xf32> to vector<8xf32>
    %34 = vector.shape_cast %33 : vector<8xf32> to vector<8x1xf32>
    %c16 = arith.constant 16 : index
    %c0_16 = arith.constant 0 : index
    %35 = vector.load %arg4[%c16, %c0_16] : memref<24x128xf32, #tpu.memory_space<vmem>>, vector<1x1xf32>
    %36 = vector.broadcast %35 : vector<1x1xf32> to vector<8x1xf32>
    %37 = arith.addf %34, %36 : vector<8x1xf32>
    %cst_17 = arith.constant 5.000000e-01 : f32
    %38 = vector.broadcast %cst_17 : f32 to vector<8x1xf32>
    %39 = arith.mulf %38, %37 : vector<8x1xf32>
    %40 = math.exp %39 : vector<8x1xf32>
    %c0_18 = arith.constant 0 : index
    %c0_19 = arith.constant 0 : index
    %41 = vector.load %arg2[%c0_18, %c0_19] : memref<8x1xf32, #tpu.memory_space<vmem>>, vector<8x1xf32>
    %42 = arith.mulf %41, %40 : vector<8x1xf32>
    %43 = arith.addf %29, %42 : vector<8x1xf32>
    %c8 = arith.constant 8 : index
    %c0_20 = arith.constant 0 : index
    %44 = vector.load %arg4[%c8, %c0_20] : memref<24x128xf32, #tpu.memory_space<vmem>>, vector<1x10xf32>
    %45 = vector.broadcast %43 : vector<8x1xf32> to vector<8x10xf32>
    %46 = vector.broadcast %44 : vector<1x10xf32> to vector<8x10xf32>
    %47 = arith.mulf %45, %46 : vector<8x10xf32>
    %c3 = arith.constant 3 : index
    %c0_21 = arith.constant 0 : index
    %48 = vector.load %arg4[%c3, %c0_21] : memref<24x128xf32, #tpu.memory_space<vmem>>, vector<1x10xf32>
    %49 = vector.broadcast %48 : vector<1x10xf32> to vector<8x10xf32>
    %50 = arith.addf %47, %49 : vector<8x10xf32>
    %51 = math.tanh %50 : vector<8x10xf32>
    %52 = arith.truncf %51 : vector<8x10xf32> to vector<8x10xbf16>
    %c224 = arith.constant 224 : index
    %c0_22 = arith.constant 0 : index
    %53 = vector.load %arg3[%c224, %c0_22] : memref<336x128xbf16, #tpu.memory_space<vmem>>, vector<10x30xbf16>
    %cst_23 = arith.constant dense<0.000000e+00> : vector<8x30xf32>
    %54 = tpu.matmul %52, %53, %cst_23 {dimension_numbers = #tpu.dot_dimension_numbers<[1], [0], [0], [1], [0, 0, 1, 1], [], []>} : vector<8x10xbf16>, vector<10x30xbf16>, vector<8x30xf32> -> vector<8x30xf32>
    %c4 = arith.constant 4 : index
    %c0_24 = arith.constant 0 : index
    %55 = vector.load %arg4[%c4, %c0_24] : memref<24x128xf32, #tpu.memory_space<vmem>>, vector<1x30xf32>
    %56 = vector.broadcast %55 : vector<1x30xf32> to vector<8x30xf32>
    %57 = arith.addf %54, %56 : vector<8x30xf32>
    %58 = math.tanh %57 : vector<8x30xf32>
    %59 = arith.truncf %58 : vector<8x30xf32> to vector<8x30xbf16>
    %c240 = arith.constant 240 : index
    %c0_25 = arith.constant 0 : index
    %60 = vector.load %arg3[%c240, %c0_25] : memref<336x128xbf16, #tpu.memory_space<vmem>>, vector<30x60xbf16>
    %cst_26 = arith.constant dense<0.000000e+00> : vector<8x60xf32>
    %61 = tpu.matmul %59, %60, %cst_26 {dimension_numbers = #tpu.dot_dimension_numbers<[1], [0], [0], [1], [0, 0, 1, 1], [], []>} : vector<8x30xbf16>, vector<30x60xbf16>, vector<8x60xf32> -> vector<8x60xf32>
    %c5 = arith.constant 5 : index
    %c0_27 = arith.constant 0 : index
    %62 = vector.load %arg4[%c5, %c0_27] : memref<24x128xf32, #tpu.memory_space<vmem>>, vector<1x60xf32>
    %63 = vector.broadcast %62 : vector<1x60xf32> to vector<8x60xf32>
    %64 = arith.addf %61, %63 : vector<8x60xf32>
    %65 = math.tanh %64 : vector<8x60xf32>
    %66 = arith.truncf %65 : vector<8x60xf32> to vector<8x60xbf16>
    %c272 = arith.constant 272 : index
    %c0_28 = arith.constant 0 : index
    %67 = vector.load %arg3[%c272, %c0_28] : memref<336x128xbf16, #tpu.memory_space<vmem>>, vector<60x128xbf16>
    %cst_29 = arith.constant dense<0.000000e+00> : vector<8x128xf32>
    %68 = tpu.matmul %66, %67, %cst_29 {dimension_numbers = #tpu.dot_dimension_numbers<[1], [0], [0], [1], [0, 0, 1, 1], [], []>} : vector<8x60xbf16>, vector<60x128xbf16>, vector<8x128xf32> -> vector<8x128xf32>
    %c6 = arith.constant 6 : index
    %c0_30 = arith.constant 0 : index
    %69 = vector.load %arg4[%c6, %c0_30] : memref<24x128xf32, #tpu.memory_space<vmem>>, vector<1x128xf32>
    %70 = vector.broadcast %69 : vector<1x128xf32> to vector<8x128xf32>
    %71 = arith.addf %68, %70 : vector<8x128xf32>
    %72 = vector.extract_strided_slice %71 {offsets = [0, 0], sizes = [8, 118], strides = [1, 1]} : vector<8x128xf32> to vector<8x118xf32>
    %73 = arith.subf %0, %72 : vector<8x118xf32>
    %74 = arith.mulf %73, %73 : vector<8x118xf32>
    %cst_31 = arith.constant dense<0.000000e+00> : vector<8xf32>
    %75 = vector.multi_reduction <add>, %74, %cst_31 [1] : vector<8x118xf32> to vector<8xf32>
    %76 = vector.shape_cast %75 : vector<8xf32> to vector<8x1xf32>
    %77 = arith.mulf %0, %0 : vector<8x118xf32>
    %cst_32 = arith.constant dense<0.000000e+00> : vector<8xf32>
    %78 = vector.multi_reduction <add>, %77, %cst_32 [1] : vector<8x118xf32> to vector<8xf32>
    %79 = vector.shape_cast %78 : vector<8xf32> to vector<8x1xf32>
    %80 = arith.mulf %72, %72 : vector<8x118xf32>
    %cst_33 = arith.constant dense<0.000000e+00> : vector<8xf32>
    %81 = vector.multi_reduction <add>, %80, %cst_33 [1] : vector<8x118xf32> to vector<8xf32>
    %82 = vector.shape_cast %81 : vector<8xf32> to vector<8x1xf32>
    %83 = arith.mulf %0, %72 : vector<8x118xf32>
    %cst_34 = arith.constant dense<0.000000e+00> : vector<8xf32>
    %84 = vector.multi_reduction <add>, %83, %cst_34 [1] : vector<8x118xf32> to vector<8xf32>
    %85 = vector.shape_cast %84 : vector<8xf32> to vector<8x1xf32>
    %86 = math.sqrt %79 : vector<8x1xf32>
    %87 = math.sqrt %76 : vector<8x1xf32>
    %cst_35 = arith.constant 9.99999996E-13 : f32
    %88 = vector.broadcast %cst_35 : f32 to vector<8x1xf32>
    %89 = arith.addf %86, %88 : vector<8x1xf32>
    %90 = arith.divf %87, %89 : vector<8x1xf32>
    %cst_36 = arith.constant 9.99999993E-9 : f32
    %91 = vector.broadcast %cst_36 : f32 to vector<8x1xf32>
    %92 = arith.maximumf %86, %91 : vector<8x1xf32>
    %93 = math.sqrt %82 : vector<8x1xf32>
    %cst_37 = arith.constant 9.99999993E-9 : f32
    %94 = vector.broadcast %cst_37 : f32 to vector<8x1xf32>
    %95 = arith.maximumf %93, %94 : vector<8x1xf32>
    %96 = arith.mulf %92, %95 : vector<8x1xf32>
    %97 = arith.divf %85, %96 : vector<8x1xf32>
    %c9 = arith.constant 9 : index
    %c0_38 = arith.constant 0 : index
    %98 = vector.load %arg4[%c9, %c0_38] : memref<24x128xf32, #tpu.memory_space<vmem>>, vector<1x10xf32>
    %99 = vector.broadcast %43 : vector<8x1xf32> to vector<8x10xf32>
    %100 = vector.broadcast %98 : vector<1x10xf32> to vector<8x10xf32>
    %101 = arith.mulf %99, %100 : vector<8x10xf32>
    %c10 = arith.constant 10 : index
    %c0_39 = arith.constant 0 : index
    %102 = vector.load %arg4[%c10, %c0_39] : memref<24x128xf32, #tpu.memory_space<vmem>>, vector<1x10xf32>
    %103 = vector.broadcast %90 : vector<8x1xf32> to vector<8x10xf32>
    %104 = vector.broadcast %102 : vector<1x10xf32> to vector<8x10xf32>
    %105 = arith.mulf %103, %104 : vector<8x10xf32>
    %106 = arith.addf %101, %105 : vector<8x10xf32>
    %c11 = arith.constant 11 : index
    %c0_40 = arith.constant 0 : index
    %107 = vector.load %arg4[%c11, %c0_40] : memref<24x128xf32, #tpu.memory_space<vmem>>, vector<1x10xf32>
    %108 = vector.broadcast %97 : vector<8x1xf32> to vector<8x10xf32>
    %109 = vector.broadcast %107 : vector<1x10xf32> to vector<8x10xf32>
    %110 = arith.mulf %108, %109 : vector<8x10xf32>
    %111 = arith.addf %106, %110 : vector<8x10xf32>
    %c7 = arith.constant 7 : index
    %c0_41 = arith.constant 0 : index
    %112 = vector.load %arg4[%c7, %c0_41] : memref<24x128xf32, #tpu.memory_space<vmem>>, vector<1x10xf32>
    %113 = vector.broadcast %112 : vector<1x10xf32> to vector<8x10xf32>
    %114 = arith.addf %111, %113 : vector<8x10xf32>
    %115 = math.tanh %114 : vector<8x10xf32>
    %c14 = arith.constant 14 : index
    %c0_42 = arith.constant 0 : index
    %116 = vector.load %arg4[%c14, %c0_42] : memref<24x128xf32, #tpu.memory_space<vmem>>, vector<1x10xf32>
    %117 = vector.broadcast %116 : vector<1x10xf32> to vector<8x10xf32>
    %118 = arith.mulf %115, %117 : vector<8x10xf32>
    %cst_43 = arith.constant dense<0.000000e+00> : vector<8xf32>
    %119 = vector.multi_reduction <add>, %118, %cst_43 [1] : vector<8x10xf32> to vector<8xf32>
    %120 = vector.shape_cast %119 : vector<8xf32> to vector<8x1xf32>
    %c17 = arith.constant 17 : index
    %c0_44 = arith.constant 0 : index
    %121 = vector.load %arg4[%c17, %c0_44] : memref<24x128xf32, #tpu.memory_space<vmem>>, vector<1x1xf32>
    %122 = vector.broadcast %121 : vector<1x1xf32> to vector<8x1xf32>
    %123 = arith.addf %120, %122 : vector<8x1xf32>
    %124 = math.exp %123 : vector<8x1xf32>
    %cst_45 = arith.constant 1.000000e+00 : f32
    %125 = vector.broadcast %cst_45 : f32 to vector<8x1xf32>
    %126 = arith.addf %125, %124 : vector<8x1xf32>
    %cst_46 = arith.constant 1.000000e+00 : f32
    %127 = vector.broadcast %cst_46 : f32 to vector<8x1xf32>
    %128 = arith.divf %127, %126 : vector<8x1xf32>
    %cst_47 = arith.constant 1.000000e+00 : f32
    %129 = vector.broadcast %cst_47 : f32 to vector<8x1xf32>
    %130 = arith.subf %129, %128 : vector<8x1xf32>
    %131 = tpu.iota {dimensions = array<i32: 1>} : vector<1x128xi32>
    %c118_i32 = arith.constant 118 : i32
    %132 = vector.broadcast %c118_i32 : i32 to vector<1x128xi32>
    %133 = arith.cmpi eq, %131, %132 : vector<1x128xi32>
    %134 = arith.extui %133 : vector<1x128xi1> to vector<1x128xi32>
    %135 = arith.sitofp %134 : vector<1x128xi32> to vector<1x128xf32>
    %136 = vector.broadcast %29 : vector<8x1xf32> to vector<8x128xf32>
    %137 = vector.broadcast %135 : vector<1x128xf32> to vector<8x128xf32>
    %138 = arith.mulf %136, %137 : vector<8x128xf32>
    %139 = arith.addf %71, %138 : vector<8x128xf32>
    %c119_i32 = arith.constant 119 : i32
    %140 = vector.broadcast %c119_i32 : i32 to vector<1x128xi32>
    %141 = arith.cmpi eq, %131, %140 : vector<1x128xi32>
    %142 = arith.extui %141 : vector<1x128xi1> to vector<1x128xi32>
    %143 = arith.sitofp %142 : vector<1x128xi32> to vector<1x128xf32>
    %144 = vector.broadcast %37 : vector<8x1xf32> to vector<8x128xf32>
    %145 = vector.broadcast %143 : vector<1x128xf32> to vector<8x128xf32>
    %146 = arith.mulf %144, %145 : vector<8x128xf32>
    %147 = arith.addf %139, %146 : vector<8x128xf32>
    %c120_i32 = arith.constant 120 : i32
    %148 = vector.broadcast %c120_i32 : i32 to vector<1x128xi32>
    %149 = arith.cmpi eq, %131, %148 : vector<1x128xi32>
    %150 = arith.extui %149 : vector<1x128xi1> to vector<1x128xi32>
    %151 = arith.sitofp %150 : vector<1x128xi32> to vector<1x128xf32>
    %c121_i32 = arith.constant 121 : i32
    %152 = vector.broadcast %c121_i32 : i32 to vector<1x128xi32>
    %153 = arith.cmpi eq, %131, %152 : vector<1x128xi32>
    %154 = arith.extui %153 : vector<1x128xi1> to vector<1x128xi32>
    %155 = arith.sitofp %154 : vector<1x128xi32> to vector<1x128xf32>
    %156 = arith.addf %151, %155 : vector<1x128xf32>
    %157 = vector.broadcast %43 : vector<8x1xf32> to vector<8x128xf32>
    %158 = vector.broadcast %156 : vector<1x128xf32> to vector<8x128xf32>
    %159 = arith.mulf %157, %158 : vector<8x128xf32>
    %160 = arith.addf %147, %159 : vector<8x128xf32>
    %c122_i32 = arith.constant 122 : i32
    %161 = vector.broadcast %c122_i32 : i32 to vector<1x128xi32>
    %162 = arith.cmpi eq, %131, %161 : vector<1x128xi32>
    %163 = arith.extui %162 : vector<1x128xi1> to vector<1x128xi32>
    %164 = arith.sitofp %163 : vector<1x128xi32> to vector<1x128xf32>
    %165 = vector.broadcast %90 : vector<8x1xf32> to vector<8x128xf32>
    %166 = vector.broadcast %164 : vector<1x128xf32> to vector<8x128xf32>
    %167 = arith.mulf %165, %166 : vector<8x128xf32>
    %168 = arith.addf %160, %167 : vector<8x128xf32>
    %c123_i32 = arith.constant 123 : i32
    %169 = vector.broadcast %c123_i32 : i32 to vector<1x128xi32>
    %170 = arith.cmpi eq, %131, %169 : vector<1x128xi32>
    %171 = arith.extui %170 : vector<1x128xi1> to vector<1x128xi32>
    %172 = arith.sitofp %171 : vector<1x128xi32> to vector<1x128xf32>
    %173 = vector.broadcast %97 : vector<8x1xf32> to vector<8x128xf32>
    %174 = vector.broadcast %172 : vector<1x128xf32> to vector<8x128xf32>
    %175 = arith.mulf %173, %174 : vector<8x128xf32>
    %176 = arith.addf %168, %175 : vector<8x128xf32>
    %c124_i32 = arith.constant 124 : i32
    %177 = vector.broadcast %c124_i32 : i32 to vector<1x128xi32>
    %178 = arith.cmpi eq, %131, %177 : vector<1x128xi32>
    %179 = arith.extui %178 : vector<1x128xi1> to vector<1x128xi32>
    %180 = arith.sitofp %179 : vector<1x128xi32> to vector<1x128xf32>
    %181 = vector.broadcast %128 : vector<8x1xf32> to vector<8x128xf32>
    %182 = vector.broadcast %180 : vector<1x128xf32> to vector<8x128xf32>
    %183 = arith.mulf %181, %182 : vector<8x128xf32>
    %184 = arith.addf %176, %183 : vector<8x128xf32>
    %c125_i32 = arith.constant 125 : i32
    %185 = vector.broadcast %c125_i32 : i32 to vector<1x128xi32>
    %186 = arith.cmpi eq, %131, %185 : vector<1x128xi32>
    %187 = arith.extui %186 : vector<1x128xi1> to vector<1x128xi32>
    %188 = arith.sitofp %187 : vector<1x128xi32> to vector<1x128xf32>
    %189 = vector.broadcast %130 : vector<8x1xf32> to vector<8x128xf32>
    %190 = vector.broadcast %188 : vector<1x128xf32> to vector<8x128xf32>
    %191 = arith.mulf %189, %190 : vector<8x128xf32>
    %192 = arith.addf %184, %191 : vector<8x128xf32>
    %c0_48 = arith.constant 0 : index
    %c0_49 = arith.constant 0 : index
    %193 = vector.load %arg5[%c0_48, %c0_49] : memref<8x128xf32, #tpu.memory_space<vmem>>, vector<8x128xf32>
    tpu.vector_store %arg5[%c0_48, %c0_49], %192 {strides = array<i32>} : memref<8x128xf32, #tpu.memory_space<vmem>>, vector<8x128xf32>,
    return
  }
  func.func @transform_0(%arg0: i32) -> (i32, i32) {
    %c0_i32 = arith.constant 0 : i32
    %c0_i32_0 = arith.constant 0 : i32
    return %arg0, %c0_i32 : i32, i32
  }
  func.func @transform_1(%arg0: i32) -> (i32, i32) {
    %c0_i32 = arith.constant 0 : i32
    %c0_i32_0 = arith.constant 0 : i32
    return %arg0, %c0_i32 : i32, i32
  }
  func.func @transform_2(%arg0: i32) -> (i32, i32) {
    %c0_i32 = arith.constant 0 : i32
    %c0_i32_0 = arith.constant 0 : i32
    %c0_i32_1 = arith.constant 0 : i32
    return %c0_i32, %c0_i32_0 : i32, i32
  }
  func.func @transform_3(%arg0: i32) -> (i32, i32) {
    %c0_i32 = arith.constant 0 : i32
    %c0_i32_0 = arith.constant 0 : i32
    %c0_i32_1 = arith.constant 0 : i32
    return %c0_i32, %c0_i32_0 : i32, i32
  }
  func.func @transform_4(%arg0: i32) -> (i32, i32) {
    %c0_i32 = arith.constant 0 : i32
    %c0_i32_0 = arith.constant 0 : i32
    return %arg0, %c0_i32 : i32, i32
  }
}

</mosaic_0001>

<bundles_post_ra>
// kernel: _forward_impl.1
= control target key start
LH: loop header
LB: loop body
LE: loop exit
PB: predicated region body
PF: predicated region fallthrough
CT: control target
= control target key end

     0   :  { %9 = vsyncpa [#allocation3], 0  ;;  %s907_s0 = inlined_call_operand.vmem [shape: f32[8,118], index: 0, kind: input, shape index: {}]   ;;  %s908_s1 = inlined_call_operand.vmem [shape: f32[8,1], index: 1, kind: input, shape index: {}]   ;;  %s909_s2 = inlined_call_operand.hbm [shape: bf16[336,128], index: 2, kind: input, shape index: {}]   ;;  %s910_s3 = inlined_call_operand.hbm [shape: f32[24,128], index: 3, kind: input, shape index: {}]   ;;  %s911_s4 = inlined_call_operand.vmem [shape: f32[8,128], index: 4, kind: output, shape index: {}]  }
   0x1   :  { %s19_s17 = sshll.u32 %s909_s2, 4  ;;  %s20_s17 = int_to_ptr.hbm [resolvable:$true] %s19_s17 }
   0x2   :  { %10 = vsyncpa [#allocation5], 0  ;;  %s814_s18 = smov [#allocation2]   ;;  %s32_s22 = sshll.u32 %s910_s3, 4  ;;  %s33_s22 = int_to_ptr.hbm [resolvable:$true] %s32_s22 }
   0x3   :  { %s21_s19 = sshll.u32 %s814_s18, 4  ;;  %s815_s23 = smov 64   ;;  %s22_s19 = int_to_ptr.vmem [resolvable:$true] %s21_s19 }
   0x4   :  { %s816_s24 = smov 4   ;;  %s817_s25 = smov [#allocation4]  }
   0x5   :  { %27 = dma.hbm_to_vmem [thread:$0]  %s20_s17, 2688, %s22_s19, [#allocation3], %s815_s23, %s815_s23, %s816_s24  }
   0x6   :  { %s34_s26 = sshll.u32 %s817_s25, 4  ;;  %s818_s27 = smov 128   ;;  %s35_s26 = int_to_ptr.vmem [resolvable:$true] %s34_s26 }
   0x7   :  { %s819_s28 = smov 8  }
   0x8   :  { %40 = dma.hbm_to_vmem [thread:$0]  %s33_s22, 384, %s35_s26, [#allocation5], %s818_s27, %s818_s27, %s819_s28  }
   0x9   :  { %810 = dma.done.wait [#allocation3], 2688  }
   0xa   :  { %811 = vsyncadd [#allocation3], 4294964608 }
   0xb   :  { %812 = dma.done.wait [#allocation5], 384  }
   0xc   :  { %813 = vsyncadd [#allocation5], 4294966912  ;;  %v66_v0 = vld [vmem:[#allocation2 + $0x38] sm:$0x7]  ;;  %vm118_vm0 = vcmask 1042432   ;;  %vm174_vm1 = vcmask 1045504  }
   0xd   :  { %v98_v1 = vunpack.c.l.b16 %v66_v0  ;;  %v632_v4 = vld [vmem:[#allocation2 + $0x58] sm:$0xf]  ;;  %v693_v5 = vld [vmem:[#allocation2 + $0x58] sm:$0x30]  ;;  %v689_v6 = vld [vmem:[#allocation2 + $0x30] sm:$0xff]  ;;  %vm114_vm2 = vcmask 965632  }
   0xe   :  { %v633_v7 = vor.u32 %v693_v5, %v632_v4  ;;  %v688_v9 = vld [vmem:[#allocation2 + $0x28] sm:$0xff]  ;;  %v687_v10 = vld [vmem:[#allocation2 + $0x20] sm:$0xff]  ;;  %v686_v11 = vld [vmem:[#allocation2 + $0x18] sm:$0xff]  ;;  %vm170_vm3 = vcmask 490496   ;;  %vm214_vm4 = vcmask 1046528   ;;  %vm210_vm5 = vcmask 244736  }
   0xf   :  { %v106_v2 = vpack.c.b16 %v98_v1, %v98_v1  ;;  %v685_v12 = vld [vmem:[#allocation2 + $0x10] sm:$0xff]  ;;  %v684_v13 = vld [vmem:[#allocation2 + $0x8] sm:$0xff]  ;;  %v683_v14 = vld [vmem:[#allocation2] sm:$0xff]  ;;  %vm235_vm6 = vcmask 80896   ;;  %v820_v48 = vmov 0   ;;  %vm282_vm7 = vcmask 1044480  }
  0x10   :  { %v176_v8 = vsel %vm174_vm1, %v633_v7, 0  ;;  %v857_v15 = vld [vmem:[%s907_s0] sm:$0xff]  ;;  %v692_v17 = vld [vmem:[#allocation2 + $0x50] sm:$0xff]  ;;  %v691_v18 = vld [vmem:[#allocation2 + $0x48] sm:$0xff]  ;;  %711 = vset.pattern.permute.xlu1 %v820_v48  ;;  %712 = vset.pattern.permute.xlu0 %v820_v48 }
  0x11   :  { %v120_v3 = vsel %vm118_vm0, %v106_v2, 0  ;;  %182 = vmatpush.bf16.msra.mxu1 %v176_v8  ;;  %v51_v16 = vpack.c.bf16 %v857_v15, %v857_v15  ;;  %v690_v19 = vld [vmem:[#allocation2 + $0x40] sm:$0xff]  ;;  %v714_v20 = vld [vmem:[#allocation4] ss:$0 sm:$0xff]  ;;  %v695_v27 = vld [vmem:[#allocation2 + $0x68] sm:$0x70]  ;;  %713 = vset.pattern.permute.xlu2 %v820_v48 }
  0x12   :  { %122 = vmatpush.bf16.msra.mxu0 %v120_v3  ;;  %v641_v26 = vld [vmem:[#allocation2 + $0x68] sm:$0xf]  ;;  %v694_v30 = vld [vmem:[#allocation2 + $0x60] sm:$0xff]  ;;  %v717_v40 = vld [vmem:[#allocation4 + $0xd] ss:$0 sm:$0xff] }
  0x13   :  { %v642_v28 = vor.u32 %v695_v27, %v641_v26  ;;  %v715_v31 = vld [vmem:[#allocation4 + $0x1] ss:$0 sm:$0xff]  ;;  %v716_v37 = vld [vmem:[#allocation4 + $0x2] ss:$0 sm:$0xff]  ;;  %v718_v45 = vld [vmem:[#allocation4 + $0xc] ss:$0 sm:$0xff]  ;;  %v396_v27 = vmul.f32 %v857_v15, %v857_v15 }
  0x14   :  { %v719_v49 = vld [vmem:[#allocation4 + $0x10] ss:$0 sm:$0xff]  ;;  %v720_v54 = vld [vmem:[#allocation4 + $0xf] ss:$0 sm:$0xff]  ;;  %v254_v56 = vld [vmem:[%s908_s1] sm:$0xff] }
  0x15   :  { %183 = vmatpush.bf16.msra.mxu1 %v692_v17  ;;  %v216_v29 = vsel %vm214_vm4, %v642_v28, 0  ;;  %v646_v61 = vld [vmem:[#allocation2 + $0x70] sm:$0xf]  ;;  %v696_v62 = vld [vmem:[#allocation2 + $0x70] sm:$0x10]  ;;  %v699_v26 = vld [vmem:[#allocation2 + $0x88] sm:$0xff] }
  0x16   :  { %123 = vmatpush.bf16.msra.mxu0 %v689_v6  ;;  %224 = vmatpush.bf16.msra.mxu2 %v216_v29  ;;  %v647_v63 = vor.u32 %v696_v62, %v646_v61  ;;  %v655_v1 = vld [vmem:[#allocation2 + $0x80] sm:$0xf]  ;;  %v698_v2 = vld [vmem:[#allocation2 + $0x80] sm:$0x70]  ;;  %v721_v5 = vld [vmem:[#allocation4 + $0x8] ss:$0 sm:$0xff] }
  0x17   :  { %v656_v3 = vor.u32 %v698_v2, %v655_v1  ;;  %v722_v6 = vld [vmem:[#allocation4 + $0x3] ss:$0 sm:$0xff]  ;;  %v397_v28 = vsel %vm114_vm2, %v396_v27, 0.0  ;;  %v725_v29 = vld [vmem:[#allocation4 + $0x5] ss:$0 sm:$0xff] }
  0x18   :  { %v284_v0 = vsel %vm282_vm7, %v647_v63, 0 }
  0x19   :  { %184 = vmatpush.bf16.msra.mxu1 %v691_v18  ;;  %293 = vmatpush.bf16.msra.mxu3 %v284_v0  ;;  %v322_v4 = vsel %vm214_vm4, %v656_v3, 0  ;;  %v724_v18 = vld [vmem:[#allocation4 + $0x4] ss:$0 sm:$0xff] }
  0x1a   :  { %124 = vmatpush.bf16.msra.mxu0 %v688_v9  ;;  %225 = vmatpush.bf16.msra.mxu2 %v694_v30 }
  0x1d   :  { %185 = vmatpush.bf16.msra.mxu1 %v690_v19  ;;  %330 = vmatpush.bf16.msrb.mxu3 %v322_v4 }
  0x1e   :  { %125 = vmatpush.bf16.msra.mxu0 %v687_v10 }
  0x22   :  { %126 = vmatpush.bf16.msra.mxu0 %v686_v11 }
  0x26   :  { %127 = vmatpush.bf16.msra.mxu0 %v685_v12  ;;  %v697_v12 = vld [vmem:[#allocation2 + $0x78] sm:$0xff] }
  0x27   :  { %331 = vmatpush.bf16.msrb.mxu3 %v697_v12 }
  0x2a   :  { %128 = vmatpush.bf16.msra.mxu0 %v684_v13  ;;  %v672_v13 = vld [vmem:[#allocation2 + $0xa0] sm:$0xf] }
  0x2e   :  { %129 = vmatpush.bf16.msra.mxu0 %v683_v14  ;;  %v702_v14 = vld [vmem:[#allocation2 + $0xa0] sm:$0x30] }
  0x31   :  { %617 = vmatmul.msk.bf16.vlgmr.msra.gmra.mxu0 %vm114_vm2, %v51_v16  ;;  %v673_v16 = vor.u32 %v702_v14, %v672_v13 }
  0x33   :  { %v376_v17 = vsel %vm174_vm1, %v673_v16, 0 }
  0x34   :  { %382 = vmatpush.bf16.msrb.mxu2 %v376_v17 }
  0xae   :  { %v131_v21 = vpop.f32.mrf.mxu0 }
  0xaf   :  { %v132_v22 = vadd.f32 %v714_v20, %v131_v21 }
  0xb1   :  { %732 = vtanh.f32 %v132_v22 }
  0xb6   :  { %v133_v23 = vpop.f32.mrf.mxu0 }
  0xb7   :  { %v733_v24 = vpop.eup %732 }
  0xb8   :  { %v136_v25 = vpack.c.bf16 %v733_v24, %v733_v24  ;;  %v701_v24 = vld [vmem:[#allocation2 + $0x98] sm:$0xff] }
  0xb9   :  { %383 = vmatpush.bf16.msrb.mxu2 %v701_v24 }
  0xba   :  { %634 = vmatmul.msk.bf16.vlgmr.msra.gmra.mxu1 %vm170_vm3, %v136_v25  ;;  %v700_v25 = vld [vmem:[#allocation2 + $0x90] sm:$0xff] }
  0xbd   :  { %384 = vmatpush.bf16.msrb.mxu2 %v700_v25 }
  0xc1   :  { %385 = vmatpush.bf16.msrb.mxu2 %v699_v26 }
 0x137   :  { %v187_v32 = vpop.f32.mrf.mxu1 }
 0x138   :  { %v188_v33 = vadd.f32 %v715_v31, %v187_v32 }
 0x13a   :  { %734 = vtanh.f32 %v188_v33 }
 0x13f   :  { %v189_v34 = vpop.f32.mrf.mxu1 }
 0x140   :  { %v735_v35 = vpop.eup %734 }
 0x141   :  { %v192_v36 = vpack.c.bf16 %v735_v35, %v735_v35  ;;  %v726_v35 = vld [vmem:[#allocation4 + $0x6] ss:$0 sm:$0xff] }
 0x143   :  { %643 = vmatmul.msk.bf16.vlgmr.msra.gmra.mxu2 %vm210_vm5, %v192_v36 }
 0x1c6   :  { %v227_v38 = vpop.f32.mrf.mxu2 }
 0x1c7   :  { %v228_v39 = vadd.f32 %v716_v37, %v227_v38 }
 0x1c9   :  { %736 = vtanh.f32 %v228_v39 }
 0x1ce   :  { %v229_v41 = vpop.f32.mrf.mxu2 }
 0x1cf   :  { %v737_v42 = vpop.eup %736 }
 0x1d0   :  { %v244_v43 = vmul.f32 %v737_v42, %v717_v40  ;;  %v234_v46 = vmul.f32 %v737_v42, %v718_v45 }
 0x1d2   :  { %v245_v44 = vsel %vm235_vm6, %v244_v43, 0.0  ;;  %v236_v47 = vsel %vm235_vm6, %v234_v46, 0.0 }
 0x1d3   :  { %246 = vadd.xlane.f32.xlu0 %v245_v44 }
 0x1db   :  { %237 = vadd.xlane.f32.xlu0 %v236_v47 }
 0x246   :  { %v247_v50 = vpop.xlane.xlu0 %246 }
 0x247   :  { %v867_v51 = vadd.f32 %v719_v49, %v247_v50 }
 0x249   :  { %v251_v52 = vmul.f32 0.5, %v867_v51 }
 0x24b   :  { %v252_v53 = vmul.f32 1.442695, %v251_v52 }
 0x24d   :  { %738 = vpow2.f32 %v252_v53 }
 0x24e   :  { %v238_v55 = vpop.xlane.xlu0 %237 }
 0x24f   :  { %v873_v58 = vadd.f32 %v720_v54, %v238_v55 }
 0x253   :  { %v739_v57 = vpop.eup %738 }
 0x254   :  { %v255_v59 = vmul.f32 %v739_v57, %v254_v56 }
 0x256   :  { %v256_v60 = vadd.f32 %v255_v59, %v873_v58 }
 0x258   :  { %260 = vperm.xlu1 %711, %v256_v60  }
 0x282   :  { %398 = vadd.xlane.f32.xlu1 %v397_v28 }
 0x2ca   :  { %v877_v7 = vpop.permute.xlu1 %260 }
 0x2cb   :  { %v264_v8 = vmul.f32 %v721_v5, %v877_v7 }
 0x2cd   :  { %v267_v9 = vadd.f32 %v722_v6, %v264_v8 }
 0x2cf   :  { %740 = vtanh.f32 %v267_v9 }
 0x2d5   :  { %v741_v10 = vpop.eup %740 }
 0x2d6   :  { %v269_v11 = vpack.c.bf16 %v741_v10, %v741_v10 }
 0x2d8   :  { %648 = vmatmul.msk.bf16.vlgmr.msra.gmra.mxu3 %vm235_vm6, %v269_v11 }
 0x2f5   :  { %v399_v46 = vpop.xlane.xlu1 %398 }
 0x2f6   :  { %vm415_vm8 = vcmp.eq.f32.partialorder %v399_v46, inf  ;;  %vm417_vm9 = vcmp.eq.f32.partialorder %v399_v46, 0.0 }
 0x35b   :  { %v295_v19 = vpop.f32.mrf.mxu3 }
 0x35c   :  { %v296_v20 = vadd.f32 %v724_v18, %v295_v19 }
 0x35e   :  { %742 = vtanh.f32 %v296_v20 }
 0x363   :  { %v297_v21 = vpop.f32.mrf.mxu3 }
 0x364   :  { %v743_v22 = vpop.eup %742 }
 0x365   :  { %v300_v23 = vpack.c.bf16 %v743_v22, %v743_v22 }
 0x367   :  { %657 = vmatmul.msk.bf16.vlgmr.msrb.gmra.mxu3 %vm210_vm5, %v300_v23 }
 0x3ea   :  { %v333_v30 = vpop.f32.mrf.mxu3 }
 0x3eb   :  { %v334_v31 = vadd.f32 %v725_v29, %v333_v30 }
 0x3ed   :  { %744 = vtanh.f32 %v334_v31 }
 0x3ee   :  { %746 = vrsqrt.f32 %v399_v46 }
 0x3f2   :  { %v335_v32 = vpop.f32.mrf.mxu3 }
 0x3f3   :  { %v745_v33 = vpop.eup %744 }
 0x3f4   :  { %v338_v34 = vpack.c.bf16 %v745_v33, %v745_v33  ;;  %v747_v47 = vpop.eup %746 }
 0x3f5   :  { %v409_v48 = vmul.f32 %v747_v47, %v399_v46 }
 0x3f6   :  { %674 = vmatmul.msk.bf16.vlgmr.msrb.gmra.mxu2 %vm170_vm3, %v338_v34 }
 0x3f7   :  { %v410_v49 = vmul.f32 %v747_v47, %v409_v48 }
 0x3f9   :  { %v411_v50 = vmul.f32 0.5, %v410_v49 }
 0x3fb   :  { %v412_v52 = vsub.f32 1.5, %v411_v50 }
 0x3fd   :  { %v413_v53 = vmul.f32 %v747_v47, %v412_v52 }
 0x3ff   :  { %v414_v54 = vmul.f32 %v413_v53, %v399_v46  ;;  %v729_v53 = vld [vmem:[#allocation4 + $0x7] ss:$0 sm:$0xff] }
 0x401   :  { %v416_v55 = vsel %vm415_vm8, %v399_v46, %v414_v54 }
 0x479   :  { %v387_v36 = vpop.f32.mrf.mxu2 }
 0x47a   :  { %v887_v37 = vadd.f32 %v726_v35, %v387_v36 }
 0x47c   :  { %v404_v38 = vmul.f32 %v887_v37, %v857_v15  ;;  %v400_v39 = vmul.f32 %v887_v37, %v887_v37  ;;  %v391_v42 = vsub.f32 %v857_v15, %v887_v37  ;;  %v418_v15 = vand.u32 2147483648, %v399_v46 }
 0x47e   :  { %v405_v40 = vsel %vm114_vm2, %v404_v38, 0.0  ;;  %v401_v41 = vsel %vm114_vm2, %v400_v39, 0.0  ;;  %v392_v44 = vmul.f32 %v391_v42, %v391_v42  ;;  %v419_v57 = vsel %vm417_vm9, %v418_v15, %v416_v55  ;;  %v727_v39 = vld [vmem:[#allocation4 + $0xa] ss:$0 sm:$0xff]  ;;  %v730_v55 = vld [vmem:[#allocation4 + $0xe] ss:$0 sm:$0xff] }
 0x47f   :  { %406 = vadd.xlane.f32.xlu0 %v405_v40  ;;  %402 = vadd.xlane.f32.xlu2 %v401_v41  ;;  %v432_v59 = vadd.f32 1e-12, %v419_v57  ;;  %v448_v14 = vmax.f32 %v419_v57, 1e-08  ;;  %v723_v40 = vld [vmem:[#allocation4 + $0x9] ss:$0 sm:$0xff] }
 0x480   :  { %v393_v45 = vsel %vm114_vm2, %v392_v44, 0.0  ;;  %v480_v48 = vmul.f32 %v723_v40, %v877_v7 }
 0x481   :  { %v389_v43 = vpop.f32.mrf.mxu2  ;;  %vm438_vm12 = vweird.f32 %v432_v59  ;;  %v444_v22 = vand.u32 2147483648, %v432_v59  ;;  %v442_v24 = vand.u32 2147483647, %v432_v59 }
 0x483   :  { %v445_v28 = vor.u32 1.1754944e-38, %v444_v22  ;;  %vm443_vm1 = vcmp.eq.f32.partialorder %v442_v24, 8.507059e+37 }
 0x487   :  { %394 = vadd.xlane.f32.xlu2 %v393_v45  ;;  %v728_v45 = vld [vmem:[#allocation4 + $0xb] ss:$0 sm:$0xff] }
 0x493   :  { %528 = vperm.xlu0 %712, %v873_v58  }
 0x4f2   :  { %v403_v56 = vpop.xlane.xlu2 %402  ;;  %v407_v46 = vpop.xlane.xlu0 %406 }
 0x4f3   :  { %748 = vrsqrt.f32 %v403_v56  ;;  %vm456_vm10 = vcmp.eq.f32.partialorder %v403_v56, inf  ;;  %v459_v9 = vand.u32 2147483648, %v403_v56  ;;  %vm458_vm11 = vcmp.eq.f32.partialorder %v403_v56, 0.0 }
 0x4f4   :  { %750 = vrcp.f32 %v432_v59 }
 0x4f9   :  { %v749_v60 = vpop.eup %748 }
 0x4fa   :  { %v450_v58 = vmul.f32 %v749_v60, %v403_v56  ;;  %v395_v61 = vpop.xlane.xlu2 %394  ;;  %v751_v0 = vpop.eup %750 }
 0x4fb   :  { %752 = vrsqrt.f32 %v395_v61  ;;  %v434_v5 = vmul.f32 %v751_v0, %v432_v59  ;;  %vm439_vm13 = vweird.f32 %v751_v0  ;;  %vm427_vm14 = vcmp.eq.f32.partialorder %v395_v61, inf }
 0x4fc   :  { %v451_v62 = vmul.f32 %v749_v60, %v450_v58  ;;  %vm440_vm15 = vmor %vm438_vm12, %vm439_vm13  ;;  %v430_v27 = vand.u32 2147483648, %v395_v61  ;;  %vm429_vm0 = vcmp.eq.f32.partialorder %v395_v61, 0.0 }
 0x4fd   :  { %v435_v13 = vsub.f32 1.0, %v434_v5 }
 0x4fe   :  { %v452_v63 = vmul.f32 0.5, %v451_v62 }
 0x4ff   :  { %v436_v20 = vmul.f32 %v751_v0, %v435_v13 }
 0x500   :  { %v453_v1 = vsub.f32 1.5, %v452_v63 }
 0x501   :  { %v753_v2 = vpop.eup %752  ;;  %v437_v23 = vadd.f32 %v751_v0, %v436_v20 }
 0x502   :  { %v454_v3 = vmul.f32 %v749_v60, %v453_v1  ;;  %v421_v4 = vmul.f32 %v753_v2, %v395_v61  ;;  %v521_v60 = vlaneseq }
 0x503   :  { %v441_v29 = vsel %vm440_vm15, %v751_v0, %v437_v23  ;;  %v821_v0 = vmov 0.0  }
 0x504   :  { %v455_v6 = vmul.f32 %v454_v3, %v403_v56  ;;  %v422_v8 = vmul.f32 %v753_v2, %v421_v4  ;;  %v446_v33 = vsel %vm443_vm1, %v445_v28, %v441_v29  ;;  %v522_v58 = vand.u32 127, %v521_v60 }
 0x506   :  { %v457_v10 = vsel %vm456_vm10, %v403_v56, %v455_v6  ;;  %v423_v11 = vmul.f32 0.5, %v422_v8  ;;  %vm523_vm7 = vcmp.eq.s32.totalorder %v522_v58, 118  ;;  %vm543_vm8 = vcmp.eq.s32.totalorder %v522_v58, 120 }
 0x507   :  { %v460_v12 = vsel %vm458_vm11, %v459_v9, %v457_v10  ;;  %vm546_vm9 = vcmp.eq.s32.totalorder %v522_v58, 121  ;;  %v675_v1 = vsel %vm523_vm7, 1.0, %v821_v0  ;;  %vm533_vm10 = vcmp.eq.s32.totalorder %v522_v58, 119 }
 0x508   :  { %v461_v16 = vmax.f32 %v460_v12, 1e-08  ;;  %v424_v17 = vsub.f32 1.5, %v423_v11  ;;  %v677_v4 = vsel %vm543_vm8, 1.0, %v821_v0  ;;  %v678_v5 = vsel %vm546_vm9, 1.0, %v821_v0 }
 0x509   :  { %v676_v8 = vsel %vm533_vm10, 1.0, %v821_v0  ;;  %v549_v9 = vadd.f32 %v678_v5, %v677_v4  ;;  %vm557_vm11 = vcmp.eq.s32.totalorder %v522_v58, 123  ;;  %vm572_vm1 = vcmp.eq.s32.totalorder %v522_v58, 125 }
 0x50a   :  { %v462_v18 = vmul.f32 %v461_v16, %v448_v14  ;;  %v425_v19 = vmul.f32 %v753_v2, %v424_v17  ;;  %v529_v2 = vpop.permute.xlu0 %528 }
 0x50b   :  { %v531_v6 = vmul.f32 %v675_v1, %v529_v2  ;;  %v550_v14 = vmul.f32 %v549_v9, %v877_v7 }
 0x50c   :  { %754 = vrcp.f32 %v462_v18  ;;  %v426_v21 = vmul.f32 %v425_v19, %v395_v61  ;;  %v474_v34 = vand.u32 2147483648, %v462_v18  ;;  %v472_v38 = vand.u32 2147483647, %v462_v18 }
 0x50d   :  { %vm468_vm3 = vweird.f32 %v462_v18  ;;  %v532_v10 = vadd.f32 %v531_v6, %v887_v37 }
 0x50e   :  { %v428_v25 = vsel %vm427_vm14, %v395_v61, %v426_v21  ;;  %v475_v42 = vor.u32 1.1754944e-38, %v474_v34  ;;  %vm473_vm5 = vcmp.eq.f32.partialorder %v472_v38, 8.507059e+37  ;;  %v731_v61 = vld [vmem:[#allocation4 + $0x11] ss:$0 sm:$0xff] }
 0x50f   :  { %v431_v31 = vsel %vm429_vm0, %v430_v27, %v428_v25  ;;  %vm562_vm0 = vcmp.eq.s32.totalorder %v522_v58, 124 }
 0x510   :  { %v447_v35 = vmul.f32 %v446_v33, %v431_v31  ;;  %v681_v33 = vsel %vm562_vm0, 1.0, %v821_v0 }
 0x512   :  { %v755_v26 = vpop.eup %754  ;;  %v483_v44 = vmul.f32 %v727_v39, %v447_v35 }
 0x513   :  { %v464_v30 = vmul.f32 %v755_v26, %v462_v18  ;;  %vm469_vm2 = vweird.f32 %v755_v26  ;;  %v680_v18 = vsel %vm557_vm11, 1.0, %v821_v0 }
 0x514   :  { %vm470_vm4 = vmor %vm468_vm3, %vm469_vm2  ;;  %v484_v50 = vadd.f32 %v483_v44, %v480_v48 }
 0x515   :  { %v465_v32 = vsub.f32 1.0, %v464_v30 }
 0x517   :  { %v466_v36 = vmul.f32 %v755_v26, %v465_v32 }
 0x519   :  { %v467_v41 = vadd.f32 %v755_v26, %v466_v36  ;;  %v682_v36 = vsel %vm572_vm1, 1.0, %v821_v0 }
 0x51b   :  { %v471_v43 = vsel %vm470_vm4, %v755_v26, %v467_v41 }
 0x51c   :  { %v476_v47 = vsel %vm473_vm5, %v475_v42, %v471_v43 }
 0x51d   :  { %v477_v49 = vmul.f32 %v476_v47, %v407_v46 }
 0x51f   :  { %v487_v52 = vmul.f32 %v728_v45, %v477_v49  ;;  %v560_v22 = vmul.f32 %v680_v18, %v477_v49 }
 0x521   :  { %v488_v54 = vadd.f32 %v487_v52, %v484_v50 }
 0x523   :  { %v491_v15 = vadd.f32 %v729_v53, %v488_v54 }
 0x525   :  { %756 = vtanh.f32 %v491_v15 }
 0x52b   :  { %v757_v56 = vpop.eup %756 }
 0x52c   :  { %v495_v57 = vmul.f32 %v757_v56, %v730_v55 }
 0x52e   :  { %v496_v59 = vsel %vm235_vm6, %v495_v57, 0.0  ;;  %vm552_vm6 = vcmp.eq.s32.totalorder %v522_v58, 122 }
 0x52f   :  { %497 = vadd.xlane.f32.xlu2 %v496_v59  ;;  %v679_v12 = vsel %vm552_vm6, 1.0, %v821_v0 }
 0x530   :  { %v555_v20 = vmul.f32 %v679_v12, %v447_v35 }
 0x547   :  { %538 = vperm.xlu2 %713, %v867_v51  }
 0x5a2   :  { %v498_v62 = vpop.xlane.xlu2 %497 }
 0x5a3   :  { %v501_v63 = vadd.f32 %v731_v61, %v498_v62 }
 0x5a5   :  { %v502_v3 = vmul.f32 1.442695, %v501_v63 }
 0x5a7   :  { %758 = vpow2.f32 %v502_v3 }
 0x5aa   :  { %v539_v51 = vpop.permute.xlu2 %538 }
 0x5ab   :  { %v541_v11 = vmul.f32 %v676_v8, %v539_v51 }
 0x5ad   :  { %v759_v13 = vpop.eup %758  ;;  %v542_v16 = vadd.f32 %v541_v11, %v532_v10 }
 0x5ae   :  { %v504_v17 = vadd.f32 1.0, %v759_v13 }
 0x5af   :  { %v551_v19 = vadd.f32 %v550_v14, %v542_v16 }
 0x5b0   :  { %760 = vrcp.f32 %v504_v17  ;;  %v516_v27 = vand.u32 2147483648, %v504_v17  ;;  %v514_v28 = vand.u32 2147483647, %v504_v17  ;;  %vm510_vm13 = vweird.f32 %v504_v17 }
 0x5b1   :  { %v556_v21 = vadd.f32 %v555_v20, %v551_v19 }
 0x5b2   :  { %v517_v7 = vor.u32 1.1754944e-38, %v516_v27  ;;  %vm515_vm15 = vcmp.eq.f32.partialorder %v514_v28, 8.507059e+37 }
 0x5b3   :  { %v561_v23 = vadd.f32 %v560_v22, %v556_v21 }
 0x5b6   :  { %v761_v24 = vpop.eup %760 }
 0x5b7   :  { %v506_v25 = vmul.f32 %v761_v24, %v504_v17  ;;  %vm511_vm12 = vweird.f32 %v761_v24 }
 0x5b8   :  { %vm512_vm14 = vmor %vm510_vm13, %vm511_vm12 }
 0x5b9   :  { %v507_v26 = vsub.f32 1.0, %v506_v25 }
 0x5bb   :  { %v508_v37 = vmul.f32 %v761_v24, %v507_v26 }
 0x5bd   :  { %v509_v29 = vadd.f32 %v761_v24, %v508_v37 }
 0x5bf   :  { %v513_v30 = vsel %vm512_vm14, %v761_v24, %v509_v29 }
 0x5c0   :  { %v518_v31 = vsel %vm515_vm15, %v517_v7, %v513_v30 }
 0x5c1   :  { %567 = vperm.xlu2 %713, %v518_v31   ;;  %v520_v32 = vsub.f32 1.0, %v518_v31 }
 0x5c3   :  { %577 = vperm.xlu1 %711, %v520_v32  }
 0x61b   :  { %v568_v34 = vpop.permute.xlu2 %567 }
 0x61c   :  { %v570_v35 = vmul.f32 %v681_v33, %v568_v34 }
 0x61e   :  { %v571_v39 = vadd.f32 %v570_v35, %v561_v23 }
 0x635   :  { %v578_v38 = vpop.permute.xlu1 %577 }
 0x636   :  { %v580_v40 = vmul.f32 %v682_v36, %v578_v38 }
 0x638   :  { %v581_v41 = vadd.f32 %v580_v40, %v571_v39 }
 0x63a   :  { %582 = vst [vmem:[%s911_s4] sm:$0xff] %v581_v41 }
 0x63b   :  { %587 = vsyncpa [#allocation3], 1 }
 0x63c   :  { %588 = vsyncpa [#allocation5], 1 }

</bundles_post_ra>
